<compile_context>
chip_gen: v5e
topology: v5e:2x2
jax: 0.10.0
libtpu: 0.0.40
codegen_flags: <defaults>
</compile_context>

<pallas_src>
import jax
import jax.numpy as jnp
from jax.experimental import pallas as pl
from jax.experimental.pallas import tpu as pltpu

LANE = 128   # lane width of a vreg
SUB = 8      # sublane count of a vreg


def _round_up(x, m):
    return (x + m - 1) // m * m


def winenet_kernel(x_ref, w1_ref, w2_ref, w3_ref, b_ref, out_ref):
    x = x_ref[...]                      # (TB, D_IN)  compute dtype (bf16)
    b = b_ref[...]                      # (8, D_PAD)  f32; rows 0..2 = b1,b2,b3
    b1 = b[0:1, :]
    b2 = b[1:2, :]
    b3 = b[2:3, :]

    # fc1 + Sigmoid  (MXU bf16 -> f32 acc; elementwise in f32)
    h1 = jnp.dot(x, w1_ref[...], preferred_element_type=jnp.float32) + b1
    h1 = jax.nn.sigmoid(h1)
    h1 = h1.astype(w2_ref.dtype)

    # fc2 + Sigmoid
    h2 = jnp.dot(h1, w2_ref[...], preferred_element_type=jnp.float32) + b2
    h2 = jax.nn.sigmoid(h2)
    h2 = h2.astype(w3_ref.dtype)

    # fc3 (logits, no softmax in forward())
    out_ref[...] = (
        jnp.dot(h2, w3_ref[...], preferred_element_type=jnp.float32) + b3
    )


def winenet_forward(x, params, *, block_b=256, compute_dtype=jnp.bfloat16):
    """x: (B, n_input) f32; params: (in,out) weights + (1,out) biases (f32).

    Returns (B, n_classes) f32 logits.
    """
    w1, b1 = params["w1"], params["b1"]
    w2, b2 = params["w2"], params["b2"]
    w3, b3 = params["w3"], params["b3"]

    B, n_input = x.shape
    n_hidden = w1.shape[1]
    n_mid = w2.shape[1]            # 50
    n_classes = w3.shape[1]

    d_in = _round_up(n_input, LANE)
    d_pad = _round_up(max(n_hidden, n_mid, n_classes), LANE)

    # ---- pad params to lane-dense, (8,128)-aligned shapes; cast to MXU dtype ----
    w1p = jnp.zeros((d_in, d_pad), compute_dtype).at[:n_input, :n_hidden].set(
        w1.astype(compute_dtype))
    w2p = jnp.zeros((d_pad, d_pad), compute_dtype).at[:n_hidden, :n_mid].set(
        w2.astype(compute_dtype))
    w3p = jnp.zeros((d_pad, d_pad), compute_dtype).at[:n_mid, :n_classes].set(
        w3.astype(compute_dtype))
    # Pack the three biases into a single f32 (8, d_pad) slab -> one DMA.
    bias = (jnp.zeros((SUB, d_pad), jnp.float32)
            .at[0, :n_hidden].set(b1.reshape(-1))
            .at[1, :n_mid].set(b2.reshape(-1))
            .at[2, :n_classes].set(b3.reshape(-1)))

    # ---- batch tiling (tile big enough to amortize per-step overhead, but
    #      conservative vs v7x's 64 MiB VMEM with double buffering) ----
    tb = min(block_b, _round_up(B, SUB))
    b_pad = _round_up(B, tb)
    xp = jnp.zeros((b_pad, d_in), compute_dtype).at[:B, :n_input].set(
        x.astype(compute_dtype))

    grid = (b_pad // tb,)

    flops = 2 * b_pad * (d_in * d_pad + 2 * d_pad * d_pad)
    transcendentals = 2 * b_pad * d_pad
    bytes_accessed = int(
        xp.size * xp.dtype.itemsize
        + w1p.size * w1p.dtype.itemsize
        + w2p.size * w2p.dtype.itemsize
        + w3p.size * w3p.dtype.itemsize
        + bias.size * 4
        + b_pad * d_pad * 4)

    out_pad = pl.pallas_call(
        winenet_kernel,
        out_shape=jax.ShapeDtypeStruct((b_pad, d_pad), jnp.float32),
        grid=grid,
        in_specs=[
            pl.BlockSpec((tb, d_in), lambda i: (i, 0)),      # x: one batch tile/step
            pl.BlockSpec((d_in, d_pad), lambda i: (0, 0)),   # w1: resident in VMEM
            pl.BlockSpec((d_pad, d_pad), lambda i: (0, 0)),  # w2: resident
            pl.BlockSpec((d_pad, d_pad), lambda i: (0, 0)),  # w3: resident
            pl.BlockSpec((SUB, d_pad), lambda i: (0, 0)),    # packed biases
        ],
        out_specs=pl.BlockSpec((tb, d_pad), lambda i: (i, 0)),   # lane-dense store
        compiler_params=pltpu.CompilerParams(
            dimension_semantics=("parallel",)),
        cost_estimate=pl.CostEstimate(
            flops=flops,
            transcendentals=transcendentals,
            bytes_accessed=bytes_accessed),
    )(xp, w1p, w2p, w3p, bias)

    return out_pad[:B, :n_classes]


def init_params(key, n_input, n_hidden, n_classes):
    """PyTorch-Linear-style uniform(-1/sqrt(fan_in), 1/sqrt(fan_in)) init.
    Weights stored (in, out), i.e. transposed vs torch's (out, in)."""
    ks = jax.random.split(key, 6)

    def lin(kw, kb, fan_in, fan_out):
        bound = 1.0 / jnp.sqrt(jnp.float32(fan_in))
        w = jax.random.uniform(kw, (fan_in, fan_out), jnp.float32, -bound, bound)
        b = jax.random.uniform(kb, (1, fan_out), jnp.float32, -bound, bound)
        return w, b

    w1, b1 = lin(ks[0], ks[1], n_input, n_hidden)
    w2, b2 = lin(ks[2], ks[3], n_hidden, 50)
    w3, b3 = lin(ks[4], ks[5], 50, n_classes)
    return {"w1": w1, "b1": b1, "w2": w2, "b2": b2, "w3": w3, "b3": b3}


def winenet_forward_ref(x, p, compute_dtype=jnp.float32):
    """Pure-JAX reference with optional matching bf16 matmul inputs."""
    cd = compute_dtype
    h1 = jax.nn.sigmoid(
        jnp.dot(x.astype(cd), p["w1"].astype(cd),
                preferred_element_type=jnp.float32) + p["b1"])
    h1 = h1.astype(cd)
    h2 = jax.nn.sigmoid(
        jnp.dot(h1, p["w2"].astype(cd),
                preferred_element_type=jnp.float32) + p["b2"])
    h2 = h2.astype(cd)
    return jnp.dot(h2, p["w3"].astype(cd),
                   preferred_element_type=jnp.float32) + p["b3"]


if __name__ == "__main__":
    # Wine-dataset-like sizes: 13 features, 32 hidden, 3 classes, batch 8.
    B, n_input, n_hidden, n_classes = 8, 13, 32, 3

    key = jax.random.PRNGKey(0)
    kx, kp = jax.random.split(key)
    x = jax.random.normal(kx, (B, n_input), dtype=jnp.float32)
    params = init_params(kp, n_input, n_hidden, n_classes)

    out = jax.block_until_ready(winenet_forward(x, params))
    assert out.shape == (B, n_classes)

    # Tight check vs a reference doing the same bf16-input / f32-accumulate math,
    # loose check vs the pure-f32 reference.
    ref_same = winenet_forward_ref(x, params, compute_dtype=jnp.bfloat16)
    ref_f32 = winenet_forward_ref(x, params, compute_dtype=jnp.float32)
    assert jnp.allclose(out, ref_same, atol=1e-3, rtol=1e-3), "mismatch vs bf16 ref"
    assert jnp.allclose(out, ref_f32, atol=5e-2, rtol=5e-2), "mismatch vs f32 ref"

    # inference() path (Softmax(dim=1)) — plain JAX glue over the kernel logits.
    probs = jax.nn.softmax(out, axis=1)
    assert jnp.allclose(jnp.sum(probs, axis=1), 1.0, atol=1e-5)

    print("KERNEL_OK")
</pallas_src>

<mosaic_0001>
module attributes {stable_mosaic.version = 11 : i64} {
  func.func @winenet_kernel(%arg0: i32, %arg1: memref<8x128xbf16, #tpu.memory_space<vmem>>, %arg2: memref<128x128xbf16, #tpu.memory_space<vmem>>, %arg3: memref<128x128xbf16, #tpu.memory_space<vmem>>, %arg4: memref<128x128xbf16, #tpu.memory_space<vmem>>, %arg5: memref<8x128xf32, #tpu.memory_space<vmem>>, %arg6: memref<8x128xf32, #tpu.memory_space<vmem>>) attributes {dimension_semantics = [#tpu.dimension_semantics<parallel>], iteration_bounds = array<i64: 1>, scalar_prefetch = 0 : i64, scratch_operands = 0 : i64, tpu.core_type = #tpu.core_type<tc>, window_params = [{transform_indices = @transform_0, window_bounds = array<i64: 8, 128>}, {pipeline_mode = #tpu.pipeline_mode<synchronous>, transform_indices = @transform_1, window_bounds = array<i64: 128, 128>}, {pipeline_mode = #tpu.pipeline_mode<synchronous>, transform_indices = @transform_2, window_bounds = array<i64: 128, 128>}, {pipeline_mode = #tpu.pipeline_mode<synchronous>, transform_indices = @transform_3, window_bounds = array<i64: 128, 128>}, {pipeline_mode = #tpu.pipeline_mode<synchronous>, transform_indices = @transform_4, window_bounds = array<i64: 8, 128>}, {transform_indices = @transform_5, window_bounds = array<i64: 8, 128>}]} {
    %c0 = arith.constant 0 : index
    %c0_0 = arith.constant 0 : index
    %0 = vector.load %arg1[%c0, %c0_0] : memref<8x128xbf16, #tpu.memory_space<vmem>>, vector<8x128xbf16>
    %c0_1 = arith.constant 0 : index
    %c0_2 = arith.constant 0 : index
    %1 = vector.load %arg5[%c0_1, %c0_2] : memref<8x128xf32, #tpu.memory_space<vmem>>, vector<8x128xf32>
    %2 = vector.extract_strided_slice %1 {offsets = [0, 0], sizes = [1, 128], strides = [1, 1]} : vector<8x128xf32> to vector<1x128xf32>
    %3 = vector.extract_strided_slice %1 {offsets = [1, 0], sizes = [1, 128], strides = [1, 1]} : vector<8x128xf32> to vector<1x128xf32>
    %4 = vector.extract_strided_slice %1 {offsets = [2, 0], sizes = [1, 128], strides = [1, 1]} : vector<8x128xf32> to vector<1x128xf32>
    %c0_3 = arith.constant 0 : index
    %c0_4 = arith.constant 0 : index
    %5 = vector.load %arg2[%c0_3, %c0_4] : memref<128x128xbf16, #tpu.memory_space<vmem>>, vector<128x128xbf16>
    %cst = arith.constant dense<0.000000e+00> : vector<8x128xf32>
    %6 = tpu.matmul %0, %5, %cst {dimension_numbers = #tpu.dot_dimension_numbers<[1], [0], [0], [1], [0, 0, 1, 1], [], []>} : vector<8x128xbf16>, vector<128x128xbf16>, vector<8x128xf32> -> vector<8x128xf32>
    %7 = vector.broadcast %2 : vector<1x128xf32> to vector<8x128xf32>
    %8 = arith.addf %6, %7 : vector<8x128xf32>
    %9 = arith.negf %8 : vector<8x128xf32>
    %10 = math.exp %9 : vector<8x128xf32>
    %cst_5 = arith.constant 1.000000e+00 : f32
    %11 = vector.broadcast %cst_5 : f32 to vector<8x128xf32>
    %12 = arith.addf %11, %10 : vector<8x128xf32>
    %13 = arith.divf %11, %12 : vector<8x128xf32>
    %14 = arith.truncf %13 : vector<8x128xf32> to vector<8x128xbf16>
    %c0_6 = arith.constant 0 : index
    %c0_7 = arith.constant 0 : index
    %15 = vector.load %arg3[%c0_6, %c0_7] : memref<128x128xbf16, #tpu.memory_space<vmem>>, vector<128x128xbf16>
    %cst_8 = arith.constant dense<0.000000e+00> : vector<8x128xf32>
    %16 = tpu.matmul %14, %15, %cst_8 {dimension_numbers = #tpu.dot_dimension_numbers<[1], [0], [0], [1], [0, 0, 1, 1], [], []>} : vector<8x128xbf16>, vector<128x128xbf16>, vector<8x128xf32> -> vector<8x128xf32>
    %17 = vector.broadcast %3 : vector<1x128xf32> to vector<8x128xf32>
    %18 = arith.addf %16, %17 : vector<8x128xf32>
    %19 = arith.negf %18 : vector<8x128xf32>
    %20 = math.exp %19 : vector<8x128xf32>
    %cst_9 = arith.constant 1.000000e+00 : f32
    %21 = vector.broadcast %cst_9 : f32 to vector<8x128xf32>
    %22 = arith.addf %21, %20 : vector<8x128xf32>
    %23 = arith.divf %21, %22 : vector<8x128xf32>
    %24 = arith.truncf %23 : vector<8x128xf32> to vector<8x128xbf16>
    %c0_10 = arith.constant 0 : index
    %c0_11 = arith.constant 0 : index
    %25 = vector.load %arg4[%c0_10, %c0_11] : memref<128x128xbf16, #tpu.memory_space<vmem>>, vector<128x128xbf16>
    %cst_12 = arith.constant dense<0.000000e+00> : vector<8x128xf32>
    %26 = tpu.matmul %24, %25, %cst_12 {dimension_numbers = #tpu.dot_dimension_numbers<[1], [0], [0], [1], [0, 0, 1, 1], [], []>} : vector<8x128xbf16>, vector<128x128xbf16>, vector<8x128xf32> -> vector<8x128xf32>
    %27 = vector.broadcast %4 : vector<1x128xf32> to vector<8x128xf32>
    %28 = arith.addf %26, %27 : vector<8x128xf32>
    %c0_13 = arith.constant 0 : index
    %c0_14 = arith.constant 0 : index
    %29 = vector.load %arg6[%c0_13, %c0_14] : memref<8x128xf32, #tpu.memory_space<vmem>>, vector<8x128xf32>
    tpu.vector_store %arg6[%c0_13, %c0_14], %28 {strides = array<i32>} : memref<8x128xf32, #tpu.memory_space<vmem>>, vector<8x128xf32>,
    return
  }
  func.func @transform_0(%arg0: i32) -> (i32, i32) {
    %c0_i32 = arith.constant 0 : i32
    %c0_i32_0 = arith.constant 0 : i32
    return %arg0, %c0_i32 : i32, i32
  }
  func.func @transform_1(%arg0: i32) -> (i32, i32) {
    %c0_i32 = arith.constant 0 : i32
    %c0_i32_0 = arith.constant 0 : i32
    %c0_i32_1 = arith.constant 0 : i32
    return %c0_i32, %c0_i32_0 : i32, i32
  }
  func.func @transform_2(%arg0: i32) -> (i32, i32) {
    %c0_i32 = arith.constant 0 : i32
    %c0_i32_0 = arith.constant 0 : i32
    %c0_i32_1 = arith.constant 0 : i32
    return %c0_i32, %c0_i32_0 : i32, i32
  }
  func.func @transform_3(%arg0: i32) -> (i32, i32) {
    %c0_i32 = arith.constant 0 : i32
    %c0_i32_0 = arith.constant 0 : i32
    %c0_i32_1 = arith.constant 0 : i32
    return %c0_i32, %c0_i32_0 : i32, i32
  }
  func.func @transform_4(%arg0: i32) -> (i32, i32) {
    %c0_i32 = arith.constant 0 : i32
    %c0_i32_0 = arith.constant 0 : i32
    %c0_i32_1 = arith.constant 0 : i32
    return %c0_i32, %c0_i32_0 : i32, i32
  }
  func.func @transform_5(%arg0: i32) -> (i32, i32) {
    %c0_i32 = arith.constant 0 : i32
    %c0_i32_0 = arith.constant 0 : i32
    return %arg0, %c0_i32 : i32, i32
  }
}

</mosaic_0001>

<bundles_post_ra>
// kernel: tpu_custom_call.1
= control target key start
LH: loop header
LB: loop body
LE: loop exit
PB: predicated region body
PF: predicated region fallthrough
CT: control target
= control target key end

     0   :  { %10 = vsyncpa [#allocation3], 0  ;;  %s742_s0 = inlined_call_operand.hbm [shape: bf16[8,128], index: 0, kind: input, shape index: {}]   ;;  %s743_s1 = inlined_call_operand.hbm [shape: bf16[128,128], index: 1, kind: input, shape index: {}]   ;;  %s744_s2 = inlined_call_operand.hbm [shape: bf16[128,128], index: 2, kind: input, shape index: {}]   ;;  %s745_s3 = inlined_call_operand.hbm [shape: bf16[128,128], index: 3, kind: input, shape index: {}]   ;;  %s746_s4 = inlined_call_operand.hbm [shape: f32[8,128], index: 4, kind: input, shape index: {}]   ;;  %s747_s5 = inlined_call_operand.hbm [shape: f32[8,128], index: 5, kind: output, shape index: {}]  }
   0x1   :  { %11 = vsyncpa [#allocation6], 0 }
   0x2   :  { %12 = vsyncpa [#allocation9], 0  ;;  %s29_s20 = sshll.u32 %s743_s1, 4  ;;  %s30_s20 = int_to_ptr.hbm [resolvable:$true] %s29_s20 }
   0x3   :  { %13 = vsyncpa [#allocation4], 0  ;;  %s681_s21 = smov [#allocation5]   ;;  %s55_s25 = sshll.u32 %s745_s3, 4  ;;  %s56_s25 = int_to_ptr.hbm [resolvable:$true] %s55_s25 }
   0x4   :  { %s31_s22 = sshll.u32 %s681_s21, 4  ;;  %s682_s26 = smov 64   ;;  %s32_s22 = int_to_ptr.vmem [resolvable:$true] %s31_s22 }
   0x5   :  { %s683_s27 = smov 4   ;;  %s684_s28 = smov [#allocation8]  }
   0x6   :  { %37 = dma.hbm_to_vmem [thread:$0]  %s30_s20, 1024, %s32_s22, [#allocation6], %s682_s26, %s682_s26, %s683_s27  }
   0x7   :  { %s57_s29 = sshll.u32 %s684_s28, 4  ;;  %s19_s7 = sshll.u32 %s742_s0, 4  ;;  %s58_s29 = int_to_ptr.vmem [resolvable:$true] %s57_s29  ;;  %s20_s7 = int_to_ptr.hbm [resolvable:$true] %s19_s7 }
   0x8   :  { %63 = dma.hbm_to_vmem [thread:$0]  %s56_s25, 1024, %s58_s29, [#allocation9], %s682_s26, %s682_s26, %s683_s27  }
   0x9   :  { %s42_s9 = sshll.u32 %s744_s2, 4  ;;  %s685_s10 = smov [#allocation2]   ;;  %s43_s9 = int_to_ptr.hbm [resolvable:$true] %s42_s9 }
   0xa   :  { %s21_s11 = sshll.u32 %s685_s10, 4  ;;  %s686_s3 = smov [#allocation7]   ;;  %s22_s11 = int_to_ptr.vmem [resolvable:$true] %s21_s11 }
   0xb   :  { %24 = dma.hbm_to_vmem [thread:$0]  %s20_s7, 64, %s22_s11, [#allocation3]  }
   0xc   :  { %s44_s12 = sshll.u32 %s686_s3, 4  ;;  %s69_s15 = sshll.u32 %s746_s4, 4  ;;  %s45_s12 = int_to_ptr.vmem [resolvable:$true] %s44_s12  ;;  %s70_s15 = int_to_ptr.hbm [resolvable:$true] %s69_s15 }
   0xd   :  { %50 = dma.hbm_to_vmem [thread:$0]  %s43_s9, 1024, %s45_s12, [#allocation6], %s682_s26, %s682_s26, %s683_s27  }
   0xe   :  { %s687_s0 = smov [#allocation10]  }
   0xf   :  { %s71_s16 = sshll.u32 %s687_s0, 4  ;;  %s72_s16 = int_to_ptr.vmem [resolvable:$true] %s71_s16 }
  0x10   :  { %74 = dma.hbm_to_vmem [thread:$0]  %s70_s15, 128, %s72_s16, [#allocation9]  }
  0x11   :  { %673 = dma.done.wait [#allocation3], 64  }
  0x12   :  { %674 = vsyncadd [#allocation3], 4294967232 }
  0x13   :  { %675 = dma.done.wait [#allocation6], 2048  }
  0x14   :  { %676 = vsyncadd [#allocation6], 4294965248 }
  0x15   :  { %677 = dma.done.wait [#allocation9], 1152  }
  0x16   :  { %678 = vsyncadd [#allocation9], 4294966144  ;;  %v496_v0 = vld [vmem:[#allocation5 + $0x38] sm:$0xff]  ;;  %v495_v1 = vld [vmem:[#allocation5 + $0x30] sm:$0xff]  ;;  %s688_s2 = smov [#allocation11]   ;;  %s379_s19 = sshll.u32 %s747_s5, 4  ;;  %s380_s19 = int_to_ptr.hbm [resolvable:$true] %s379_s19 }
  0x17   :  { %162 = vmatpush.bf16.msra.mxu0 %v496_v0  ;;  %v494_v2 = vld [vmem:[#allocation5 + $0x28] sm:$0xff]  ;;  %v493_v3 = vld [vmem:[#allocation5 + $0x20] sm:$0xff]  ;;  %v492_v4 = vld [vmem:[#allocation5 + $0x18] sm:$0xff]  ;;  %s377_s4 = sshll.u32 %s688_s2, 4  ;;  %s378_s4 = int_to_ptr.vmem [resolvable:$true] %s377_s4 }
  0x18   :  { %v491_v5 = vld [vmem:[#allocation5 + $0x10] sm:$0xff]  ;;  %v490_v6 = vld [vmem:[#allocation5 + $0x8] sm:$0xff]  ;;  %v489_v7 = vld [vmem:[#allocation5] sm:$0xff] }
  0x19   :  { %v95_v8 = vld [vmem:[#allocation2] sm:$0xf]  ;;  %v503_v10 = vld [vmem:[#allocation7 + $0x30] sm:$0xff]  ;;  %v502_v11 = vld [vmem:[#allocation7 + $0x28] sm:$0xff] }
  0x1a   :  { %v504_v9 = vld [vmem:[#allocation7 + $0x38] sm:$0xff]  ;;  %v501_v12 = vld [vmem:[#allocation7 + $0x20] sm:$0xff]  ;;  %v499_v14 = vld [vmem:[#allocation7 + $0x10] sm:$0xff] }
  0x1b   :  { %163 = vmatpush.bf16.msra.mxu0 %v495_v1  ;;  %260 = vmatpush.bf16.msra.mxu1 %v504_v9  ;;  %v500_v13 = vld [vmem:[#allocation7 + $0x18] sm:$0xff]  ;;  %v498_v15 = vld [vmem:[#allocation7 + $0x8] sm:$0xff]  ;;  %v734_v16 = vld [vmem:[#allocation10] sm:$0xff] }
  0x1c   :  { %v497_v17 = vld [vmem:[#allocation7] sm:$0xff]  ;;  %v113_v18 = vperm.slane %v734_v16, 0  ;;  %v512_v36 = vld [vmem:[#allocation8 + $0x38] sm:$0xff]  ;;  %v511_v37 = vld [vmem:[#allocation8 + $0x30] sm:$0xff]  ;;  %v211_v44 = vperm.slane %v734_v16, 1  ;;  %v309_v62 = vperm.slane %v734_v16, 2 }
  0x1d   :  { %358 = vmatpush.bf16.msra.mxu2 %v512_v36  ;;  %v510_v38 = vld [vmem:[#allocation8 + $0x28] sm:$0xff]  ;;  %v509_v39 = vld [vmem:[#allocation8 + $0x20] sm:$0xff]  ;;  %v508_v40 = vld [vmem:[#allocation8 + $0x18] sm:$0xff] }
  0x1e   :  { %v507_v41 = vld [vmem:[#allocation8 + $0x10] sm:$0xff]  ;;  %v506_v42 = vld [vmem:[#allocation8 + $0x8] sm:$0xff]  ;;  %v505_v43 = vld [vmem:[#allocation8] sm:$0xff] }
  0x1f   :  { %164 = vmatpush.bf16.msra.mxu0 %v494_v2  ;;  %261 = vmatpush.bf16.msra.mxu1 %v503_v10 }
  0x21   :  { %359 = vmatpush.bf16.msra.mxu2 %v511_v37 }
  0x23   :  { %165 = vmatpush.bf16.msra.mxu0 %v493_v3  ;;  %262 = vmatpush.bf16.msra.mxu1 %v502_v11 }
  0x25   :  { %360 = vmatpush.bf16.msra.mxu2 %v510_v38 }
  0x27   :  { %166 = vmatpush.bf16.msra.mxu0 %v492_v4  ;;  %263 = vmatpush.bf16.msra.mxu1 %v501_v12 }
  0x29   :  { %361 = vmatpush.bf16.msra.mxu2 %v509_v39 }
  0x2b   :  { %167 = vmatpush.bf16.msra.mxu0 %v491_v5  ;;  %264 = vmatpush.bf16.msra.mxu1 %v500_v13 }
  0x2d   :  { %362 = vmatpush.bf16.msra.mxu2 %v508_v40 }
  0x2f   :  { %168 = vmatpush.bf16.msra.mxu0 %v490_v6  ;;  %265 = vmatpush.bf16.msra.mxu1 %v499_v14 }
  0x31   :  { %363 = vmatpush.bf16.msra.mxu2 %v507_v41 }
  0x33   :  { %169 = vmatpush.bf16.msra.mxu0 %v489_v7  ;;  %266 = vmatpush.bf16.msra.mxu1 %v498_v15 }
  0x35   :  { %364 = vmatpush.bf16.msra.mxu2 %v506_v42 }
  0x36   :  { %170 = vmatmul.bf16.vlgmr.msra.gmra.mxu0 %v95_v8 }
  0x37   :  { %267 = vmatpush.bf16.msra.mxu1 %v497_v17 }
  0x39   :  { %365 = vmatpush.bf16.msra.mxu2 %v505_v43 }
  0xb3   :  { %v171_v19 = vpop.f32.mrf.mxu0 }
  0xb4   :  { %v172_v20 = vadd.f32 %v171_v19, %v113_v18 }
  0xb6   :  { %v423_v21 = vmul.f32 -1.442695, %v172_v20 }
  0xb8   :  { %521 = vpow2.f32 %v423_v21 }
  0xbb   :  { %v173_v22 = vpop.f32.mrf.mxu0 }
  0xbe   :  { %v522_v23 = vpop.eup %521 }
  0xbf   :  { %v178_v24 = vadd.f32 1.0, %v522_v23 }
  0xc1   :  { %523 = vrcp.f32 %v178_v24  ;;  %v190_v28 = vand.u32 2147483648, %v178_v24  ;;  %v188_v30 = vand.u32 2147483647, %v178_v24  ;;  %vm184_vm1 = vweird.f32 %v178_v24 }
  0xc3   :  { %v191_v32 = vor.u32 1.1754944e-38, %v190_v28  ;;  %vm189_vm3 = vcmp.eq.f32.partialorder %v188_v30, 8.507059e+37 }
  0xc7   :  { %v524_v25 = vpop.eup %523 }
  0xc8   :  { %v180_v26 = vmul.f32 %v524_v25, %v178_v24  ;;  %vm185_vm0 = vweird.f32 %v524_v25 }
  0xc9   :  { %vm186_vm2 = vmor %vm184_vm1, %vm185_vm0 }
  0xca   :  { %v181_v27 = vsub.f32 1.0, %v180_v26 }
  0xcc   :  { %v182_v29 = vmul.f32 %v524_v25, %v181_v27 }
  0xce   :  { %v183_v31 = vadd.f32 %v524_v25, %v182_v29 }
  0xd0   :  { %v187_v33 = vsel %vm186_vm2, %v524_v25, %v183_v31 }
  0xd1   :  { %v192_v34 = vsel %vm189_vm3, %v191_v32, %v187_v33 }
  0xd2   :  { %v194_v35 = vpack.c.bf16 %v192_v34, %v192_v34 }
  0xd4   :  { %268 = vmatmul.bf16.vlgmr.msra.gmra.mxu1 %v194_v35 }
 0x151   :  { %v269_v45 = vpop.f32.mrf.mxu1 }
 0x152   :  { %v270_v46 = vadd.f32 %v269_v45, %v211_v44 }
 0x154   :  { %v456_v47 = vmul.f32 -1.442695, %v270_v46 }
 0x156   :  { %525 = vpow2.f32 %v456_v47 }
 0x159   :  { %v271_v48 = vpop.f32.mrf.mxu1 }
 0x15c   :  { %v526_v49 = vpop.eup %525 }
 0x15d   :  { %v276_v50 = vadd.f32 1.0, %v526_v49 }
 0x15f   :  { %527 = vrcp.f32 %v276_v50  ;;  %v288_v54 = vand.u32 2147483648, %v276_v50  ;;  %v286_v56 = vand.u32 2147483647, %v276_v50  ;;  %vm282_vm5 = vweird.f32 %v276_v50 }
 0x161   :  { %v289_v58 = vor.u32 1.1754944e-38, %v288_v54  ;;  %vm287_vm7 = vcmp.eq.f32.partialorder %v286_v56, 8.507059e+37 }
 0x165   :  { %v528_v51 = vpop.eup %527 }
 0x166   :  { %v278_v52 = vmul.f32 %v528_v51, %v276_v50  ;;  %vm283_vm4 = vweird.f32 %v528_v51 }
 0x167   :  { %vm284_vm6 = vmor %vm282_vm5, %vm283_vm4 }
 0x168   :  { %v279_v53 = vsub.f32 1.0, %v278_v52 }
 0x16a   :  { %v280_v55 = vmul.f32 %v528_v51, %v279_v53 }
 0x16c   :  { %v281_v57 = vadd.f32 %v528_v51, %v280_v55 }
 0x16e   :  { %v285_v59 = vsel %vm284_vm6, %v528_v51, %v281_v57 }
 0x16f   :  { %v290_v60 = vsel %vm287_vm7, %v289_v58, %v285_v59 }
 0x170   :  { %v292_v61 = vpack.c.bf16 %v290_v60, %v290_v60 }
 0x172   :  { %366 = vmatmul.bf16.vlgmr.msra.gmra.mxu2 %v292_v61 }
 0x1f5   :  { %v367_v63 = vpop.f32.mrf.mxu2 }
 0x1f6   :  { %v368_v0 = vadd.f32 %v367_v63, %v309_v62 }
 0x1f8   :  { %371 = vst [vmem:[#allocation11] sm:$0xff] %v368_v0 }
 0x1f9   :  { %382 = dma.vmem_to_hbm [thread:$0]  %s378_s4, 128, %s380_s19, [#allocation4]  }
 0x1fd   :  { %v369_v1 = vpop.f32.mrf.mxu2 }
 0x1fe   :  { %679 = dma.done.wait [#allocation4], 128  }
 0x1ff   :  { %680 = vsyncadd [#allocation4], 4294967168 }
 0x200   :  { %387 = vsyncpa [#allocation3], 1 }
 0x201   :  { %388 = vsyncpa [#allocation6], 1 }
 0x202   :  { %389 = vsyncpa [#allocation9], 1 }
 0x203   :  { %390 = vsyncpa [#allocation4], 1 }

</bundles_post_ra>
